<compile_context>
chip_gen: v7x
topology: tpu7x:2x2x1
jax: 0.10.0
libtpu: 0.0.40
codegen_flags: <defaults>
</compile_context>

<pallas_src>
import jax
import jax.numpy as jnp
from jax.experimental import pallas as pl
from jax.experimental.pallas import tpu as pltpu


def _drop_path_kernel(scale_ref, x_ref, o_ref):
    """Row-broadcast multiply: o = x * per-sample scale (f32 math).

    scale_ref : VMEM (n, 1)  f32, 0.0 or 1/keep_prob per sample
    x_ref     : VMEM (n, bc) tile of the flattened input
    o_ref     : VMEM (n, bc) tile of the flattened output
    """
    x = x_ref[...].astype(jnp.float32)
    o_ref[...] = (x * scale_ref[...]).astype(o_ref.dtype)


def drop_path(x, drop_p=0.0, training=False, *, key=None):
    """JAX/Pallas equivalent of the PyTorch `drop_path` function.

    x : (n_samples, C, H, W) array (NCHW, matching the PyTorch reference).
    """
    if drop_p == 0.0 or not training:
        return x

    keep_prob = 1.0 - drop_p
    n = x.shape[0]
    if key is None:
        key = jax.random.PRNGKey(0)

    # Per-sample Bernoulli(keep_prob) / keep_prob, computed once in f32.
    keep = jax.random.bernoulli(key, p=keep_prob, shape=(n,))
    scale = jnp.where(keep, jnp.float32(1.0 / keep_prob), jnp.float32(0.0))
    scale = scale.reshape(n, 1)

    # Flatten to a lane-dense 2D layout; pad the flat dim to a multiple of 128.
    flat = x.reshape(n, -1)
    f = flat.shape[1]
    pad = (-f) % 128
    if pad:
        flat = jnp.pad(flat, ((0, 0), (0, pad)))
    fp = flat.shape[1]

    # Tile only the flat dim; all samples share one row block.  Cap block size
    # so 2x (in/out) double-buffering stays well under VMEM on every generation.
    bytes_per_el = flat.dtype.itemsize
    max_block_bytes = 4 * 1024 * 1024
    bc = fp
    if n * bc * bytes_per_el > max_block_bytes:
        bc = max(128, ((max_block_bytes // (n * bytes_per_el)) // 128) * 128)
    grid = (pl.cdiv(fp, bc),)

    out_flat = pl.pallas_call(
        _drop_path_kernel,
        out_shape=jax.ShapeDtypeStruct((n, fp), flat.dtype),
        grid=grid,
        in_specs=[
            pl.BlockSpec((n, 1), lambda j: (0, 0)),    # per-sample scale column
            pl.BlockSpec((n, bc), lambda j: (0, j)),   # lane-dense x tile
        ],
        out_specs=pl.BlockSpec((n, bc), lambda j: (0, j)),
        input_output_aliases={1: 0},                   # output overwrites x
        compiler_params=pltpu.CompilerParams(
            dimension_semantics=("parallel",),         # shards across TCs on v7x
        ),
    )(scale, flat)

    if pad:
        out_flat = out_flat[:, :f]
    return out_flat.reshape(x.shape)


class DropPath:
    """Stochastic depth module (mirrors the PyTorch nn.Module)."""

    def __init__(self, drop_p=0.0):
        self.drop_p = drop_p
        self.training = True  # PyTorch modules default to training mode.

    def __call__(self, x, key=None):
        return drop_path(x, self.drop_p, self.training, key=key)


if __name__ == "__main__":
    key = jax.random.PRNGKey(0)
    kx, kd = jax.random.split(key)
    # Shapes implied by the docstring: (n_samples, 2, dspl_size, dspl_size).
    x = jax.random.normal(kx, (4, 2, 16, 16), dtype=jnp.float32)

    # Training mode with non-zero drop probability -> kernel runs.
    module = DropPath(drop_p=0.25)
    module.training = True
    y = jax.block_until_ready(module(x, key=kd))
    assert y.shape == x.shape and y.dtype == x.dtype

    # Sanity: each sample is either zeroed or scaled by exactly 1/keep_prob.
    keep_prob = 1.0 - module.drop_p
    for i in range(x.shape[0]):
        kept = bool(jnp.allclose(y[i], x[i] / keep_prob, atol=1e-5, rtol=1e-5))
        dropped = bool(jnp.allclose(y[i], 0.0, atol=1e-6))
        assert kept or dropped, f"sample {i} has a mixed mask"

    # Eval mode (or drop_p == 0) is an identity pass-through.
    module.training = False
    y_eval = jax.block_until_ready(module(x))
    assert bool(jnp.allclose(y_eval, x))

    print("KERNEL_OK")
</pallas_src>

<mosaic_0001>
module attributes {stable_mosaic.version = 11 : i64} {
  func.func @_drop_path_kernel(%arg0: i32, %arg1: memref<4x1xf32, #tpu.memory_space<vmem>>, %arg2: memref<4x512xf32, #tpu.memory_space<vmem>>, %arg3: memref<4x512xf32, #tpu.memory_space<vmem>>) attributes {dimension_semantics = [#tpu.dimension_semantics<parallel>], iteration_bounds = array<i64: 1>, scalar_prefetch = 0 : i64, scratch_operands = 0 : i64, tpu.core_type = #tpu.core_type<tc>, window_params = [{pipeline_mode = #tpu.pipeline_mode<synchronous>, transform_indices = @transform_0, window_bounds = array<i64: 4, 1>}, {transform_indices = @transform_1, window_bounds = array<i64: 4, 512>}, {transform_indices = @transform_2, window_bounds = array<i64: 4, 512>}]} {
    %c0 = arith.constant 0 : index
    %c0_0 = arith.constant 0 : index
    %0 = vector.load %arg2[%c0, %c0_0] : memref<4x512xf32, #tpu.memory_space<vmem>>, vector<4x512xf32>
    %c0_1 = arith.constant 0 : index
    %c0_2 = arith.constant 0 : index
    %1 = vector.load %arg1[%c0_1, %c0_2] : memref<4x1xf32, #tpu.memory_space<vmem>>, vector<4x1xf32>
    %2 = vector.broadcast %1 : vector<4x1xf32> to vector<4x512xf32>
    %3 = arith.mulf %0, %2 : vector<4x512xf32>
    %c0_3 = arith.constant 0 : index
    %c0_4 = arith.constant 0 : index
    %4 = vector.load %arg3[%c0_3, %c0_4] : memref<4x512xf32, #tpu.memory_space<vmem>>, vector<4x512xf32>
    tpu.vector_store %arg3[%c0_3, %c0_4], %3 {strides = array<i32>} : memref<4x512xf32, #tpu.memory_space<vmem>>, vector<4x512xf32>,
    return
  }
  func.func @transform_0(%arg0: i32) -> (i32, i32) {
    %c0_i32 = arith.constant 0 : i32
    %c0_i32_0 = arith.constant 0 : i32
    %c0_i32_1 = arith.constant 0 : i32
    return %c0_i32, %c0_i32_0 : i32, i32
  }
  func.func @transform_1(%arg0: i32) -> (i32, i32) {
    %c0_i32 = arith.constant 0 : i32
    %c0_i32_0 = arith.constant 0 : i32
    return %c0_i32, %arg0 : i32, i32
  }
  func.func @transform_2(%arg0: i32) -> (i32, i32) {
    %c0_i32 = arith.constant 0 : i32
    %c0_i32_0 = arith.constant 0 : i32
    return %c0_i32, %arg0 : i32, i32
  }
}

</mosaic_0001>

<bundles_post_ra>
// kernel: tpu_custom_call.1
= control target key start
LH: loop header
LB: loop body
LE: loop exit
PB: predicated region body
PF: predicated region fallthrough
CT: control target
= control target key end

     0   :  { %7 = vsyncpa [#allocation3], 0  ;;  %s157_s0 = inlined_call_operand.vmem [shape: f32[4,1], index: 0, kind: input, shape index: {}]   ;;  %s158_s1 = inlined_call_operand.hbm [shape: f32[4,512], index: 1, kind: input, shape index: {}, may-alias: {1,2}]   ;;  %s159_s2 = inlined_call_operand.hbm [shape: f32[4,512], index: 2, kind: output, shape index: {}, may-alias: {1,2}]  }
   0x1   :  { %8 = vsyncpa [#allocation4], 0  ;;  %s111_s9 = smov [#allocation2]   ;;  %s63_s13 = scalar_lea.hbm %s158_s1, 256 }
   0x2   :  { %s17_s10 = sshll.u32 %s111_s9, 4  ;;  %p64_p0 = scmp.ne.s32.totalorder %s158_s1, %s63_s13  ;;  %s18_s10 = int_to_ptr.vmem [resolvable:$true] %s17_s10 }
   0x3   :  { %p67_p1 = scmp.lt.u32.totalorder %s63_s13, %s158_s1 }
   0x5   :  { %p69_p2 = pnand %p67_p1, %p64_p0 }
   0x7   :  { %72 = shalt.err (!%p69_p2)
}
   0x8   :  { %s73_s18 = scalar_lea.vmem %s18_s10, 256  ;;  %p78_p4 = scmp.lt.s32.totalorder %s18_s10, %s18_s10 }
   0x9   :  { %p74_p3 = scmp.ne.s32.totalorder %s18_s10, %s73_s18  ;;  %p79_p5 = scmp.lt.s32.totalorder %s73_s18, %s73_s18 }
   0xb   :  { %p80_p6 = por %p79_p5, %p78_p4 }
   0xd   :  { %p81_p7 = pnand %p80_p6, %p74_p3 }
   0xf   :  { %84 = shalt.err (!%p81_p7)
}
  0x10   :  { %20 = dma.hbm_to_vmem [thread:$0]  %s158_s1, 256, %s18_s10, [#allocation3]  }
  0x11   :  { %107 = dma.done.wait [#allocation3], 256  }
  0x12   :  { %108 = vsyncadd [#allocation3], 4294967040  ;;  %v112_v0 = vmov 0   ;;  %v26_v1 = vld [vmem:[%s157_s0] sm:$0xf]  ;;  %v34_v4 = vlaneseq  ;;  %v25_v10 = vld [vmem:[#allocation2 + $0x8] sm:$0xff] }
  0x13   :  { %62 = vset.pattern.permute.xlu0 %v112_v0  ;;  %v113_v2 = vmov 839922192   ;;  %v24_v9 = vld [vmem:[#allocation2] sm:$0xff]  ;;  %s114_s23 = smov [#allocation5]  }
  0x14   :  { %29 = vperm.xlu0 %62, %v26_v1   ;;  %v32_v3 = vunpack.c.l.s4 %v113_v2  ;;  %v35_v6 = vshrl.u32 %v34_v4, 7  ;;  %s49_s1 = sshll.u32 %s114_s23, 4  ;;  %s50_s1 = int_to_ptr.vmem [resolvable:$true] %s49_s1 }
  0x15   :  { %s85_s24 = scalar_lea.vmem %s50_s1, 256  ;;  %p90_p9 = scmp.lt.s32.totalorder %s50_s1, %s50_s1 }
  0x16   :  { %v33_v5 = vunpack.c.0.s8 %v32_v3  ;;  %p86_p8 = scmp.ne.s32.totalorder %s50_s1, %s85_s24  ;;  %p91_p10 = scmp.lt.s32.totalorder %s85_s24, %s85_s24 }
  0x18   :  { %v36_v7 = vsub.s32 %v33_v5, %v35_v6  ;;  %p92_p11 = por %p91_p10, %p90_p9 }
  0x1a   :  { %p93_p12 = pnand %p92_p11, %p86_p8 }
  0x93   :  { %v30_v8 = vpop.permute.xlu0 %29 }
  0x94   :  { %v37_v11 = vrot.slane %v30_v8, %v36_v7 }
  0x96   :  { %v39_v12 = vmul.f32 %v37_v11, %v24_v9  ;;  %v40_v13 = vmul.f32 %v37_v11, %v25_v10 }
  0x98   :  { %41 = vst [vmem:[#allocation5] sm:$0xff] %v39_v12  ;;  %42 = vst [vmem:[#allocation5 + $0x8] sm:$0xff] %v40_v13 }
  0x99   :  { %96 = shalt.err (!%p93_p12)
}
  0x9a   :  { %s97_s26 = scalar_lea.hbm %s159_s2, 256 }
  0x9b   :  { %p98_p13 = scmp.ne.s32.totalorder %s159_s2, %s97_s26  ;;  %p101_p0 = scmp.lt.u32.totalorder %s97_s26, %s159_s2 }
  0x9d   :  { %p103_p1 = pnand %p101_p0, %p98_p13 }
  0x9f   :  { %106 = shalt.err (!%p103_p1)
}
  0xa0   :  { %52 = dma.vmem_to_hbm [thread:$0]  %s50_s1, 256, %s159_s2, [#allocation4]  }
  0xa1   :  { %109 = dma.done.wait [#allocation4], 256  }
  0xa2   :  { %110 = vsyncadd [#allocation4], 4294967040 }
  0xa3   :  { %56 = vsyncpa [#allocation3], 1 }
  0xa4   :  { %57 = vsyncpa [#allocation4], 1 }

</bundles_post_ra>
